<compile_context>
chip_gen: v6e
topology: v6e:2x2x1
jax: 0.10.0
libtpu: 0.0.40
codegen_flags: <defaults>
</compile_context>

<pallas_src>
import functools
import math

import jax
import jax.numpy as jnp
from jax.experimental import pallas as pl
from jax.experimental.pallas import tpu as pltpu


def _round_up(v, m):
    return (v + m - 1) // m * m


# -----------------------------------------------------------------------------
# Kernel 1: standalone FSKenrel filter generation (tiled, x built in-kernel).
# Note: at the CWRU size (6 x 25) this is dispatch-overhead bound vs. the jnp
# reference; it is kept as the direct FSKenrel.forward() equivalent.
# -----------------------------------------------------------------------------
def _fs_filter_kernel(s_ref, o_ref, *, c, inv_b2, norm, x0, dx, tl):
    # s_ref: (tn, 1) f32   o_ref: (tn, tl) f32
    j = pl.program_id(1)
    s = jnp.clip(s_ref[...], 0.01, 16.0)                       # clamp, as in forward()
    lane = jax.lax.broadcasted_iota(jnp.int32, o_ref.shape, 1) + j * tl
    x = x0 + lane.astype(jnp.float32) * dx                     # linspace(-2pi, 2pi, l_f)
    xs = x * s
    o_ref[...] = jnp.cos(c * xs) * (jnp.exp(-(xs * xs) * inv_b2) * norm)


def fs_filters_pallas(s, l_f, *, w, B):
    """FSKenrel.forward(): returns the (n_f, 1, l_f) float32 filter bank."""
    n_f = s.shape[0]
    tn = min(_round_up(n_f, 8), 256)            # sublane tile
    n_pad = _round_up(n_f, tn)
    tl = min(_round_up(l_f, 128), 2048)         # lane tile (multiple of 128)
    l_pad = _round_up(l_f, tl)

    s_pad = jnp.pad(s.astype(jnp.float32), (0, n_pad - n_f),
                    constant_values=1.0).reshape(n_pad, 1)

    c = float(w) * 2.0 * math.pi
    inv_b2 = 1.0 / (float(B) * float(B))
    norm = 1.0 / (float(B) * math.sqrt(math.pi))
    x0 = -2.0 * math.pi
    dx = 4.0 * math.pi / (l_f - 1) if l_f > 1 else 0.0

    out = pl.pallas_call(
        functools.partial(_fs_filter_kernel, c=c, inv_b2=inv_b2, norm=norm,
                          x0=x0, dx=dx, tl=tl),
        out_shape=jax.ShapeDtypeStruct((n_pad, l_pad), jnp.float32),
        grid=(n_pad // tn, l_pad // tl),
        in_specs=[pl.BlockSpec((tn, 1), lambda i, j: (i, 0))],
        out_specs=pl.BlockSpec((tn, tl), lambda i, j: (i, j)),
        compiler_params=pltpu.CompilerParams(
            dimension_semantics=("parallel", "parallel")),
    )(s_pad)
    return out[:n_f, :l_f].reshape(n_f, 1, l_f)


# -----------------------------------------------------------------------------
# Kernel 2: FUSED FSKenrel filter generation + strided conv1d + BN statistics
#           (the Net's `F.conv1d(x, FSKenrel_layer, stride=8)` + l0 stats).
# -----------------------------------------------------------------------------
def _fs_conv_bn_kernel(s_ref, sig_ref, o_ref, sum_ref, sq_ref, filt_ref, *,
                       c, inv_b2, norm, x0, dx, n_f, l_f, R, tt, T):
    # s_ref:    (NF_PAD, 1)        f32   filter-scale parameters (padded)
    # sig_ref:  (stride, tt+R-1)   f32   de-interleaved signal tile (+halo)
    # o_ref:    (NF_PAD, tt)       f32   conv output tile, lane-dense
    # sum_ref:  (NF_PAD, 1)        f32   accumulated per-filter sum
    # sq_ref:   (NF_PAD, 1)        f32   accumulated per-filter sum of squares
    # filt_ref: (NF_PAD, R*stride) f32   VMEM scratch holding the filter bank
    b = pl.program_id(0)
    j = pl.program_id(1)

    @pl.when(jnp.logical_and(b == 0, j == 0))
    def _init():
        nf_pad, k_pad = filt_ref.shape
        s = jnp.clip(s_ref[...], 0.01, 16.0)                    # (NF_PAD, 1)
        k = jax.lax.broadcasted_iota(jnp.int32, (1, k_pad), 1)
        xg = x0 + k.astype(jnp.float32) * dx                    # linspace taps
        xs = xg * s
        f = jnp.cos(c * xs) * (jnp.exp(-(xs * xs) * inv_b2) * norm)
        row = jax.lax.broadcasted_iota(jnp.int32, (nf_pad, k_pad), 0)
        col = jax.lax.broadcasted_iota(jnp.int32, (nf_pad, k_pad), 1)
        filt_ref[...] = jnp.where((row < n_f) & (col < l_f), f, 0.0)
        sum_ref[...] = jnp.zeros_like(sum_ref)
        sq_ref[...] = jnp.zeros_like(sq_ref)

    # In-kernel im2col: patch row (r*stride + cc) is sig_rs[cc, t + r], i.e. a
    # contiguous lane slice of the de-interleaved signal -- no strided loads,
    # no duplicated patch matrix in HBM.
    patches = jnp.concatenate([sig_ref[:, r:r + tt] for r in range(R)], axis=0)
    acc = jnp.dot(filt_ref[...], patches, preferred_element_type=jnp.float32)
    o_ref[...] = acc

    # BatchNorm(l0) statistics accumulated while the tile is resident in VMEM.
    lane = jax.lax.broadcasted_iota(jnp.int32, acc.shape, 1) + j * tt
    am = jnp.where(lane < T, acc, 0.0)                          # mask pad lanes
    sum_ref[...] += jnp.sum(am, axis=-1, keepdims=True)
    sq_ref[...] += jnp.sum(am * am, axis=-1, keepdims=True)


def fs_conv1d_bn_pallas(x, s, *, l_f, w, B, stride=8):
    """conv1d(x, FSKenrel(s), stride) with in-kernel filter gen + BN stats.

    x: (Bt, 1, L) f32, s: (n_f,) f32.
    Returns (fc, fsum, fsq): fc (Bt, n_f, T) f32 with T = (L - l_f)//stride + 1,
    fsum/fsq (n_f,) per-filter sum and sum of squares over (batch, time).
    """
    Bt, cin, L = x.shape
    assert cin == 1, "FSCNN first conv expects a single input channel"
    n_f = s.shape[0]
    T = (L - l_f) // stride + 1
    R = -(-l_f // stride)                     # taps span R de-interleaved rows
    K_PAD = R * stride
    NF_PAD = _round_up(n_f, 8)
    T_pad = _round_up(T, 128)
    tt = min(T_pad, 4096)                     # lane tile (review: raised cap)
    n_t = T_pad // tt
    cols = tt + R - 1                         # tile + (R-1)-column halo
    Tq = T_pad + R - 1

    # De-interleave the raw signal: sig_rs[b, cc, t'] = sig[b, t'*stride + cc].
    sig = x[:, 0, :].astype(jnp.float32)
    sig_p = jnp.pad(sig, ((0, 0), (0, stride * Tq - L)))
    sig_rs = sig_p.reshape(Bt, Tq, stride).transpose(0, 2, 1)       # (Bt, 8, Tq)
    # Per-lane-tile view with a tiny halo (R-1 columns) so BlockSpec blocks
    # never overlap; duplication is negligible (<0.1% at tt >= 4096).
    sig_tiles = jnp.stack(
        [sig_rs[:, :, jt * tt: jt * tt + cols] for jt in range(n_t)], axis=1)

    s_pad = jnp.pad(s.astype(jnp.float32), (0, NF_PAD - n_f)).reshape(NF_PAD, 1)

    c = float(w) * 2.0 * math.pi
    inv_b2 = 1.0 / (float(B) * float(B))
    norm = 1.0 / (float(B) * math.sqrt(math.pi))
    x0 = -2.0 * math.pi
    dx = 4.0 * math.pi / (l_f - 1) if l_f > 1 else 0.0

    kern = functools.partial(
        _fs_conv_bn_kernel, c=c, inv_b2=inv_b2, norm=norm, x0=x0, dx=dx,
        n_f=n_f, l_f=l_f, R=R, tt=tt, T=T)

    out, fsum, fsq = pl.pallas_call(
        kern,
        out_shape=(
            jax.ShapeDtypeStruct((Bt, NF_PAD, T_pad), jnp.float32),
            jax.ShapeDtypeStruct((NF_PAD, 1), jnp.float32),
            jax.ShapeDtypeStruct((NF_PAD, 1), jnp.float32),
        ),
        grid=(Bt, n_t),
        in_specs=[
            pl.BlockSpec((NF_PAD, 1), lambda b, j: (0, 0)),
            pl.BlockSpec((None, None, stride, cols), lambda b, j: (b, j, 0, 0)),
        ],
        out_specs=(
            pl.BlockSpec((None, NF_PAD, tt), lambda b, j: (b, 0, j)),
            pl.BlockSpec((NF_PAD, 1), lambda b, j: (0, 0)),
            pl.BlockSpec((NF_PAD, 1), lambda b, j: (0, 0)),
        ),
        scratch_shapes=[pltpu.VMEM((NF_PAD, K_PAD), jnp.float32)],
        # "arbitrary" because the BN-stat outputs and the filter scratch are
        # carried across grid steps (trade-off vs. v7x 2-TC sharding).
        compiler_params=pltpu.CompilerParams(
            dimension_semantics=("arbitrary", "arbitrary")),
    )(s_pad, sig_tiles)

    return out[:, :n_f, :T], fsum[:n_f, 0], fsq[:n_f, 0]


# -----------------------------------------------------------------------------
# Pure-JAX references and glue layers for the rest of Net (CWRU configuration).
# -----------------------------------------------------------------------------
def fs_filters_reference(s, l_f, *, w, B):
    s = jnp.clip(s.astype(jnp.float32), 0.01, 16.0).reshape(-1, 1)
    x = jnp.linspace(-2.0 * jnp.pi, 2.0 * jnp.pi, l_f,
                     dtype=jnp.float32).reshape(1, -1)
    out = jnp.cos(w * 2.0 * jnp.pi * x * s)
    out = out * jnp.exp(-((x * s) / B) ** 2) / (B * jnp.pi ** 0.5)
    return out[:, None, :]


def _batchnorm(x, gamma, beta, eps=1e-5):
    # BatchNorm1d over (N, C, L) with batch statistics (PyTorch training-mode
    # forward).
    # TODO(synk): running-stat bookkeeping is an in-place module mutation and
    #             is not reproduced.
    mean = jnp.mean(x, axis=(0, 2), keepdims=True)
    var = jnp.mean(jnp.square(x - mean), axis=(0, 2), keepdims=True)
    return (x - mean) * jax.lax.rsqrt(var + eps) * gamma + beta


def _conv1d(x, w, stride, padding):
    return jax.lax.conv_general_dilated(
        x, w, window_strides=(stride,), padding=[(padding, padding)],
        dimension_numbers=("NCH", "OIH", "NCH"),
        precision=jax.lax.Precision.HIGHEST)


def _maxpool1d(x, k, stride, padding):
    return jax.lax.reduce_window(
        x, -jnp.inf, jax.lax.max,
        window_dimensions=(1, 1, k), window_strides=(1, 1, stride),
        padding=[(0, 0), (0, 0), (padding, padding)])


def _conv2d(x, w, strides):
    return jax.lax.conv_general_dilated(
        x, w, window_strides=strides, padding="VALID",
        dimension_numbers=("NCHW", "OIHW", "NCHW"),
        precision=jax.lax.Precision.HIGHEST)


def net_forward(x, params, *, use_pallas=True):
    """Net.forward (case_study='CWRU': n_f=6, l_f=25, channel_h=16, stride_len=2)."""
    n_f, l_f, w, B = 6, 25, 2.0, 0.5
    if use_pallas:
        # Fused: filter generation + F.conv1d(x, filters, stride=8) + l0 stats.
        fc, fsum, fsq = fs_conv1d_bn_pallas(x, params["s"], l_f=l_f, w=w, B=B,
                                            stride=8)
        cnt = float(fc.shape[0] * fc.shape[2])
        mean = (fsum / cnt).reshape(1, -1, 1)
        var = (fsq / cnt).reshape(1, -1, 1) - mean * mean
        f0 = (fc - mean) * jax.lax.rsqrt(var + 1e-5) * params["l0_g"] + params["l0_b"]
    else:
        filt = fs_filters_reference(params["s"], l_f, w=w, B=B)   # (n_f, 1, l_f)
        fc = _conv1d(x, filt, 8, 0)
        f0 = _batchnorm(fc, params["l0_g"], params["l0_b"])       # l0
    f1 = _conv1d(f0, params["l1_w"], 2, 2)                        # l1.conv
    f1 = _batchnorm(f1, params["l1_g"], params["l1_b"])           # l1.bn
    f1 = jax.nn.relu(f1)
    f1 = _maxpool1d(f1, 3, 2, 0)                                  # pool
    f3 = _conv1d(f1, params["l2_w"], 1, 2)                        # l2.conv
    f3 = _batchnorm(f3, params["l2_g"], params["l2_b"])           # l2.bn
    f3 = jax.nn.relu(f3)
    f3 = _maxpool1d(f3, 5, 4, 2)                                  # pool2
    f4 = f3[:, None, :, :]                                        # unsqueeze(1)
    f5 = _conv2d(f4, params["l3_w"], (1, 2)) + params["l3_b"].reshape(1, -1, 1, 1)
    f5 = jax.nn.relu(f5)
    f6 = jnp.transpose(f5, (0, 1, 3, 2))                          # transpose(2, 3)
    # TODO(synk): PC2DLinear's runtime weight re-init on feature-size mismatch
    #             is a module mutation; shapes are static here so it never fires.
    out = jnp.einsum("bijn,nm->bm", f6, params["pcl_w"]) + params["pcl_b"]
    return out


# -----------------------------------------------------------------------------
if __name__ == "__main__":
    key = jax.random.PRNGKey(0)
    ks = jax.random.split(key, 6)

    n_class = 4
    n_f, l_f = 6, 25            # Net(case_study='CWRU')
    batch, length = 2, 512      # input signal x: (2, 1, 512)

    params = {
        "s": jnp.arange(1, n_f + 1, dtype=jnp.float32) / n_f,    # FSKenrel init
        "l0_g": jnp.ones((1, n_f, 1), jnp.float32),
        "l0_b": jnp.zeros((1, n_f, 1), jnp.float32),
        "l1_w": 0.1 * jax.random.normal(ks[0], (16, n_f, 5), jnp.float32),
        "l1_g": jnp.ones((1, 16, 1), jnp.float32),
        "l1_b": jnp.zeros((1, 16, 1), jnp.float32),
        "l2_w": 0.1 * jax.random.normal(ks[1], (16, 16, 5), jnp.float32),
        "l2_g": jnp.ones((1, 16, 1), jnp.float32),
        "l2_b": jnp.zeros((1, 16, 1), jnp.float32),
        "l3_w": 0.1 * jax.random.normal(ks[2], (1, 1, 3, 3), jnp.float32),
        "l3_b": jnp.zeros((1,), jnp.float32),
        "pcl_w": 0.3 * jax.random.normal(ks[3], (14, n_class), jnp.float32),
        "pcl_b": jnp.zeros((n_class,), jnp.float32),
    }
    x = jax.random.normal(ks[4], (batch, 1, length), jnp.float32)

    # 1) Standalone FSKenrel filter kernel vs reference.
    filt_pl = jax.block_until_ready(fs_filters_pallas(params["s"], l_f, w=2.0, B=0.5))
    filt_ref = fs_filters_reference(params["s"], l_f, w=2.0, B=0.5)
    assert filt_pl.shape == (n_f, 1, l_f), filt_pl.shape
    assert jnp.allclose(filt_pl, filt_ref, atol=1e-4, rtol=1e-4), "filter mismatch"

    # 2) Fused filter-gen + strided conv1d + BN-stats kernel vs lax.conv ref.
    fc_pl, fsum, fsq = fs_conv1d_bn_pallas(x, params["s"], l_f=l_f, w=2.0, B=0.5,
                                           stride=8)
    fc_pl = jax.block_until_ready(fc_pl)
    fc_ref = _conv1d(x, filt_ref, 8, 0)
    assert fc_pl.shape == fc_ref.shape, (fc_pl.shape, fc_ref.shape)
    assert jnp.allclose(fc_pl, fc_ref, atol=2e-3, rtol=2e-3), "fused conv mismatch"
    assert jnp.allclose(fsum, jnp.sum(fc_ref, axis=(0, 2)),
                        atol=1e-2, rtol=1e-3), "BN sum mismatch"
    assert jnp.allclose(fsq, jnp.sum(fc_ref * fc_ref, axis=(0, 2)),
                        atol=1e-2, rtol=1e-3), "BN sum-of-squares mismatch"

    # 3) Full Net forward (Pallas fused first stage) vs pure-JAX reference.
    net_pallas = jax.jit(functools.partial(net_forward, use_pallas=True))
    out = jax.block_until_ready(net_pallas(x, params))
    ref = net_forward(x, params, use_pallas=False)
    assert out.shape == (batch, n_class), out.shape
    assert jnp.allclose(out, ref, atol=5e-3, rtol=5e-3), "Net output mismatch"

    print("KERNEL_OK")
</pallas_src>

<mosaic_0001>
module attributes {stable_mosaic.version = 11 : i64} {
  func.func @_fs_filter_kernel(%arg0: i32, %arg1: i32, %arg2: memref<8x1xf32, #tpu.memory_space<vmem>>, %arg3: memref<8x128xf32, #tpu.memory_space<vmem>>) attributes {dimension_semantics = [#tpu.dimension_semantics<parallel>, #tpu.dimension_semantics<parallel>], iteration_bounds = array<i64: 1, 1>, scalar_prefetch = 0 : i64, scratch_operands = 0 : i64, tpu.core_type = #tpu.core_type<tc>, window_params = [{transform_indices = @transform_0, window_bounds = array<i64: 8, 1>}, {transform_indices = @transform_1, window_bounds = array<i64: 8, 128>}]} {
    %c0 = arith.constant 0 : index
    %c0_0 = arith.constant 0 : index
    %0 = vector.load %arg2[%c0, %c0_0] : memref<8x1xf32, #tpu.memory_space<vmem>>, vector<8x1xf32>
    %cst = arith.constant 0.00999999977 : f32
    %cst_1 = arith.constant 1.600000e+01 : f32
    %1 = vector.broadcast %cst : f32 to vector<8x1xf32>
    %2 = arith.maximumf %1, %0 : vector<8x1xf32>
    %3 = vector.broadcast %cst_1 : f32 to vector<8x1xf32>
    %4 = arith.minimumf %3, %2 : vector<8x1xf32>
    %5 = tpu.iota {dimensions = array<i32: 1>} : vector<8x128xi32>
    %c128_i32 = arith.constant 128 : i32
    %6 = arith.muli %arg1, %c128_i32 : i32
    %7 = vector.broadcast %6 : i32 to vector<8x128xi32>
    %8 = arith.addi %5, %7 : vector<8x128xi32>
    %9 = arith.sitofp %8 : vector<8x128xi32> to vector<8x128xf32>
    %cst_2 = arith.constant 0.52359879 : f32
    %10 = vector.broadcast %cst_2 : f32 to vector<8x128xf32>
    %11 = arith.mulf %9, %10 : vector<8x128xf32>
    %cst_3 = arith.constant -6.28318548 : f32
    %12 = vector.broadcast %cst_3 : f32 to vector<8x128xf32>
    %13 = arith.addf %12, %11 : vector<8x128xf32>
    %14 = vector.broadcast %4 : vector<8x1xf32> to vector<8x128xf32>
    %15 = arith.mulf %13, %14 : vector<8x128xf32>
    %cst_4 = arith.constant 12.566371 : f32
    %16 = vector.broadcast %cst_4 : f32 to vector<8x128xf32>
    %17 = arith.mulf %16, %15 : vector<8x128xf32>
    %18 = math.cos %17 : vector<8x128xf32>
    %19 = arith.mulf %15, %15 : vector<8x128xf32>
    %cst_5 = arith.constant 0.000000e+00 : f32
    %20 = vector.broadcast %cst_5 : f32 to vector<8x128xf32>
    %21 = arith.subf %20, %19 : vector<8x128xf32>
    %cst_6 = arith.constant 4.000000e+00 : f32
    %22 = vector.broadcast %cst_6 : f32 to vector<8x128xf32>
    %23 = arith.mulf %21, %22 : vector<8x128xf32>
    %24 = math.exp %23 : vector<8x128xf32>
    %cst_7 = arith.constant 1.12837923 : f32
    %25 = vector.broadcast %cst_7 : f32 to vector<8x128xf32>
    %26 = arith.mulf %24, %25 : vector<8x128xf32>
    %27 = arith.mulf %18, %26 : vector<8x128xf32>
    %c0_8 = arith.constant 0 : index
    %c0_9 = arith.constant 0 : index
    %28 = vector.load %arg3[%c0_8, %c0_9] : memref<8x128xf32, #tpu.memory_space<vmem>>, vector<8x128xf32>
    tpu.vector_store %arg3[%c0_8, %c0_9], %27 {strides = array<i32>} : memref<8x128xf32, #tpu.memory_space<vmem>>, vector<8x128xf32>,
    return
  }
  func.func @transform_0(%arg0: i32, %arg1: i32) -> (i32, i32) {
    %c0_i32 = arith.constant 0 : i32
    %c0_i32_0 = arith.constant 0 : i32
    return %arg0, %c0_i32 : i32, i32
  }
  func.func @transform_1(%arg0: i32, %arg1: i32) -> (i32, i32) {
    %c0_i32 = arith.constant 0 : i32
    return %arg0, %arg1 : i32, i32
  }
}

</mosaic_0001>

<bundles_post_ra>
// kernel: tpu_custom_call.1
= control target key start
LH: loop header
LB: loop body
LE: loop exit
PB: predicated region body
PF: predicated region fallthrough
CT: control target
= control target key end

     0   :  { %v197_v1 = vmov 0   ;;  %s247_s0 = inlined_call_operand.vmem [shape: f32[8,1], index: 0, kind: input, shape index: {}]   ;;  %s248_s1 = inlined_call_operand.hbm [shape: f32[8,128], index: 1, kind: output, shape index: {}]  }
   0x1   :  { %v9_v0 = vld [vmem:[%s247_s0] sm:$0xff]  ;;  %168 = vset.pattern.permute.xlu0 %v197_v1 }
   0x2   :  { %v10_v2 = vmax.f32 %v9_v0, 0.01 }
   0x3   :  { %6 = vsyncpa [#allocation3], 0  ;;  %v12_v4 = vlaneseq  ;;  %v198_v23 = vmov 2102212464   ;;  %v199_v25 = vmov 920167782  }
   0x4   :  { %v11_v3 = vmin.f32 %v10_v2, 16.0  ;;  %v200_v29 = vmov 1326507024   ;;  %v201_v31 = vmov 683565275   ;;  %s204_s0 = smov [#allocation2]  }
   0x5   :  { %v13_v5 = vand.u32 127, %v12_v4  ;;  %v202_v33 = vmov 2475754826   ;;  %v203_v36 = vmov 2131351028   ;;  %s144_s8 = sshll.u32 %s204_s0, 4  ;;  %s145_s8 = int_to_ptr.vmem [resolvable:$true] %s144_s8 }
   0x6   :  { %22 = vperm.xlu0 %168, %v11_v3   ;;  %s175_s9 = scalar_lea.vmem %s145_s8, 128  ;;  %p180_p1 = scmp.lt.s32.totalorder %s145_s8, %s145_s8 }
   0x7   :  { %v17_v6 = vcvt.s32.f32 %v13_v5  ;;  %p176_p0 = scmp.ne.s32.totalorder %s145_s8, %s175_s9  ;;  %p181_p2 = scmp.lt.s32.totalorder %s175_s9, %s175_s9 }
   0x9   :  { %v18_v7 = vmul.f32 0.5235988, %v17_v6  ;;  %p182_p3 = por %p181_p2, %p180_p1 }
   0xb   :  { %v19_v8 = vadd.f32 -6.2831855, %v18_v7  ;;  %p183_p4 = pnand %p182_p3, %p176_p0 }
  0x81   :  { %v23_v9 = vpop.permute.xlu0 %22 }
  0x82   :  { %v218_v10 = vmul.f32 %v23_v9, %v19_v8 }
  0x84   :  { %v221_v11 = vmul.f32 12.566371, %v218_v10 }
  0x86   :  { %v30_v12 = vand.u32 2139095040, %v221_v11  ;;  %v27_v13 = vand.u32 2147483647, %v221_v11  ;;  %vm29_vm7 = vcmp.lt.s32.totalorder %v221_v11, 0  ;;  %vm119_vm12 = vweird.f32 %v221_v11 }
  0x88   :  { %v31_v14 = vshrl.u32 %v30_v12, 23  ;;  %v34_v16 = vand.u32 8388607, %v27_v13  ;;  %vm28_vm8 = vcmp.le.f32.partialorder %v27_v13, 0.7853982 }
  0x8a   :  { %v152_v15 = vadd.s32 4294967169, %v31_v14  ;;  %v35_v19 = vor.u32 8388608, %v34_v16 }
  0x8c   :  { %v37_v17 = vadd.s32 1, %v152_v15  ;;  %v75_v27 = vshll.u32 %v35_v19, 8 }
  0x8e   :  { %vm38_vm0 = vcmp.gt.s32.totalorder %v37_v17, 0 }
  0x8f   :  { %v39_v18 = vsel %vm38_vm0, %v37_v17, 0  ;;  %v130_v17 = vmul.f32 %v218_v10, %v218_v10 }
  0x90   :  { %v41_v20 = vand.u32 31, %v39_v18  ;;  %v40_v21 = vshrl.u32 %v39_v18, 5 }
  0x92   :  { %v42_v22 = vsub.s32 32, %v41_v20  ;;  %v53_v24 = vshll.u32 %v198_v23, %v41_v20  ;;  %v56_v26 = vshll.u32 %v199_v25, %v41_v20  ;;  %v44_v32 = vshll.u32 %v201_v31, %v41_v20 }
  0x93   :  { %v47_v35 = vshll.u32 %v202_v33, %v41_v20  ;;  %v50_v38 = vshll.u32 %v203_v36, %v41_v20  ;;  %vm62_vm1 = vcmp.lt.s32.totalorder %v40_v21, 4  ;;  %vm59_vm2 = vcmp.lt.s32.totalorder %v40_v21, 1 }
  0x94   :  { %v54_v28 = vshrl.u32 %v199_v25, %v42_v22  ;;  %v57_v30 = vshrl.u32 %v200_v29, %v42_v22  ;;  %v45_v34 = vshrl.u32 %v202_v33, %v42_v22  ;;  %v48_v37 = vshrl.u32 %v203_v36, %v42_v22 }
  0x95   :  { %v51_v39 = vshrl.u32 %v198_v23, %v42_v22  ;;  %v43_v43 = vshrl.u32 %v201_v31, %v42_v22  ;;  %vm60_vm3 = vcmp.lt.s32.totalorder %v40_v21, 2  ;;  %vm61_vm4 = vcmp.lt.s32.totalorder %v40_v21, 3 }
  0x96   :  { %v55_v40 = vor.u32 %v54_v28, %v53_v24  ;;  %v58_v41 = vor.u32 %v57_v30, %v56_v26  ;;  %v46_v42 = vor.u32 %v45_v34, %v44_v32  ;;  %v49_v44 = vor.u32 %v48_v37, %v47_v35 }
  0x97   :  { %v52_v45 = vor.u32 %v51_v39, %v50_v38  ;;  %v131_v23 = vsub.f32 0.0, %v130_v17 }
  0x98   :  { %v68_v46 = vsel %vm62_vm1, %v55_v40, 920167782  ;;  %v72_v47 = vsel %vm62_vm1, %v58_v41, 1326507024  ;;  %v67_v49 = vsel %vm59_vm2, %v46_v42, %v49_v44  ;;  %v63_v52 = vsel %vm59_vm2, %v43_v43, %v46_v42 }
  0x99   :  { %v64_v48 = vsel %vm62_vm1, %v52_v45, 2102212464  ;;  %v69_v50 = vsel %vm61_vm4, %v52_v45, %v68_v46  ;;  %v71_v51 = vsel %vm59_vm2, %v49_v44, %v52_v45  ;;  %v73_v55 = vsel %vm61_vm4, %v55_v40, %v72_v47 }
  0x9a   :  { %v65_v53 = vsel %vm61_vm4, %v49_v44, %v64_v48  ;;  %v70_v54 = vsel %vm60_vm3, %v67_v49, %v69_v50  ;;  %v74_v56 = vsel %vm60_vm3, %v71_v51, %v73_v55 }
  0x9b   :  { %v227_v57 = vmul.u32.u64.low %v75_v27, %v70_v54  ;;  %v228_v58 = vmul.u32.u64.high %v75_v27, %v70_v54, %v227_v57  ;;  %v230_v59 = vmul.u32.u64.low %v75_v27, %v74_v56  ;;  %v231_v60 = vmul.u32.u64.high %v75_v27, %v74_v56, %v230_v59 }
  0x9c   :  { %v66_v61 = vsel %vm60_vm3, %v63_v52, %v65_v53 }
  0x9d   :  { %v85_v62 = vadd.s32 1, %v228_v58  ;;  %v82_v63 = vmul.u32 %v75_v27, %v66_v61  ;;  %vm84_vm5 = vc.u32 %v231_v60, %v227_v57  ;;  %v83_v14 = vadd.s32 %v227_v57, %v231_v60 }
  0x9e   :  { %v132_v27 = vmul.f32 4.0, %v131_v23 }
  0x9f   :  { %v86_v0 = vsel %vm84_vm5, %v85_v62, %v228_v58 }
  0xa0   :  { %v87_v1 = vadd.s32 %v86_v0, %v82_v63  ;;  %v133_v30 = vmul.f32 1.442695, %v132_v27 }
  0xa2   :  { %v88_v2 = vadd.s32 536870912, %v87_v1 }
  0xa4   :  { %v89_v3 = vshrl.u32 %v88_v2, 30 }
  0xa6   :  { %v90_v4 = vshll.u32 %v89_v3, 30  ;;  %v113_v32 = vsub.s32 4, %v89_v3 }
  0xa8   :  { %v91_v5 = vsub.s32 %v87_v1, %v90_v4  ;;  %v114_v33 = vsel %vm29_vm7, %v113_v32, %v89_v3 }
  0xa9   :  { %v116_v34 = vsel %vm28_vm8, 0, %v114_v33 }
  0xaa   :  { %v93_v6 = vsub.s32 0, %v91_v5  ;;  %v120_v35 = vand.u32 3, %v116_v34 }
  0xac   :  { %v153_v7 = vmin.u32 %v93_v6, %v91_v5  ;;  %vm125_vm9 = vcmp.eq.s32.totalorder %v120_v35, 2  ;;  %vm122_vm10 = vcmp.eq.s32.totalorder %v120_v35, 0  ;;  %vm121_vm11 = vcmp.lt.s32.totalorder %v120_v35, 2 }
  0xae   :  { %v95_v8 = vclz %v153_v7 }
  0xb0   :  { %v154_v9 = vadd.s32 4294967294, %v95_v8 }
  0xb2   :  { %vm155_vm6 = vcmp.lt.s32.totalorder %v154_v9, 0 }
  0xb3   :  { %v98_v12 = vsel %vm155_vm6, 0, %v154_v9 }
  0xb4   :  { %v99_v15 = vsub.s32 32, %v98_v12  ;;  %v103_v16 = vsub.s32 4294967266, %v98_v12  ;;  %v100_v18 = vshll.u32 %v91_v5, %v98_v12 }
  0xb6   :  { %v101_v19 = vshrl.u32 %v83_v14, %v99_v15  ;;  %v104_v20 = vadd.s32 127, %v103_v16 }
  0xb8   :  { %v102_v21 = vor.u32 %v101_v19, %v100_v18  ;;  %v105_v22 = vshll.u32 %v104_v20, 23 }
  0xba   :  { %v106_v24 = vor.u32 4788187, %v105_v22  ;;  %v109_v26 = vcvt.s32.f32 %v102_v21 }
  0xbc   :  { %v107_v25 = vand.u32 2147483647, %v106_v24 }
  0xbe   :  { %v110_v28 = vmul.f32 %v109_v26, %v107_v25 }
  0xc0   :  { %v111_v29 = vxor.u32 2147483648, %v110_v28 }
  0xc2   :  { %v112_v31 = vsel %vm29_vm7, %v111_v29, %v110_v28 }
  0xc3   :  { %v115_v10 = vsel %vm28_vm8, %v221_v11, %v112_v31 }
  0xc4   :  { %169 = vcosq.f32 %v115_v10 }
  0xc5   :  { %171 = vsinq.f32 %v115_v10 }
  0xc6   :  { %173 = vpow2.f32 %v133_v30 }
  0xd1   :  { %v170_v36 = vpop.eup %169 }
  0xd2   :  { %v172_v37 = vpop.eup %171  ;;  %v126_v38 = vxor.u32 2147483648, %v170_v36 }
  0xd3   :  { %v174_v39 = vpop.eup %173  ;;  %v123_v40 = vxor.u32 2147483648, %v172_v37 }
  0xd4   :  { %v127_v41 = vsel %vm125_vm9, %v126_v38, %v172_v37  ;;  %v135_v43 = vmul.f32 1.1283792, %v174_v39 }
  0xd5   :  { %v124_v13 = vsel %vm122_vm10, %v170_v36, %v123_v40 }
  0xd6   :  { %v128_v42 = vsel %vm121_vm11, %v124_v13, %v127_v41 }
  0xd7   :  { %v129_v44 = vsel %vm119_vm12, nan, %v128_v42 }
  0xd8   :  { %v136_v45 = vmul.f32 %v135_v43, %v129_v44 }
  0xda   :  { %137 = vst [vmem:[#allocation2] sm:$0xff] %v136_v45 }
  0xdb   :  { %186 = shalt.err (!%p183_p4)
}
  0xdc   :  { %147 = dma.vmem_to_hbm [thread:$0]  %s145_s8, 128, %s248_s1, [#allocation3]  }
  0xdd   :  { %195 = dma.done.wait [#allocation3], 128  }
  0xde   :  { %196 = vsyncadd [#allocation3], 4294967168 }
  0xdf   :  { %151 = vsyncpa [#allocation3], 1 }

</bundles_post_ra>
